<compile_context>
chip_gen: v5e
topology: v5e:2x2
jax: 0.10.0
libtpu: 0.0.40
codegen_flags: <defaults>
</compile_context>

<pallas_src>
import jax
import jax.numpy as jnp
from jax.experimental import pallas as pl
from jax.experimental.pallas import tpu as pltpu


def _pe_add_kernel(x_ref, pe_ref, o_ref):
    # x_ref:  (row_tile, F) block of the flattened input
    # pe_ref: (1, F)        flattened positional-encoding row (same every step)
    # o_ref:  (row_tile, F)
    # (1, F) broadcasts along sublanes against (row_tile, F) -- cheap VPU add.
    o_ref[...] = (x_ref[...] + pe_ref[...]).astype(o_ref.dtype)


def make_positional_encoding_table(embed: int, pad_size: int) -> jnp.ndarray:
    """Deterministic sinusoidal table, identical to the PyTorch __init__.

    Build this ONCE per module (like the PyTorch buffer), not per forward call.
    """
    pos = jnp.arange(pad_size, dtype=jnp.float32)[:, None]          # (pad_size, 1)
    i = jnp.arange(embed)                                            # (embed,)
    exponent = (i // 2 * 2.0 / embed).astype(jnp.float32)            # i//2*2/embed
    div = jnp.power(jnp.float32(10000.0), exponent)[None, :]         # (1, embed)
    angles = pos / div                                                # (pad_size, embed)
    pe = jnp.where((i % 2) == 0, jnp.sin(angles), jnp.cos(angles))
    return pe.astype(jnp.float32)


def _pick_row_tile(batch: int, row_bytes: int, target_block_bytes: int = 8 << 20) -> int:
    """Largest row tile that (a) divides batch, (b) keeps the block <= target
    bytes, and (c) satisfies the sublane constraint (multiple of 8 or == batch)."""
    max_rows = max(1, target_block_bytes // max(row_bytes, 1))
    if batch <= max_rows:
        return batch  # whole batch in a single (full-dim) block -- always legal
    # Largest multiple of 8 that divides batch and fits the budget.
    r = (max_rows // 8) * 8
    while r >= 8:
        if batch % r == 0:
            return r
        r -= 8
    # Fallback: keep the full batch in one block (still correct, just bigger).
    return batch


def positional_encoding_forward(x: jnp.ndarray, pe: jnp.ndarray) -> jnp.ndarray:
    """x: (batch, pad_size, embed), pe: (pad_size, embed) -> (batch, pad_size, embed)."""
    batch, pad_size, embed = x.shape
    assert pe.shape == (pad_size, embed)

    feat = pad_size * embed                      # lane-dense last axis
    x2 = x.reshape(batch, feat)                  # contiguous reshape (free in XLA)
    pe2 = pe.reshape(1, feat).astype(x.dtype)    # match dtype, pre-shaped for the add

    dtype_bytes = x.dtype.itemsize
    row_bytes = feat * dtype_bytes
    row_tile = _pick_row_tile(batch, row_bytes)
    grid = (batch // row_tile,)

    # Budget: double-buffered input + output blocks + the pe row, plus slack.
    block_bytes = row_tile * row_bytes
    vmem_limit = int(min(100 << 20, max(32 << 20, 4 * block_bytes + row_bytes + (4 << 20))))

    grid_spec = pltpu.PrefetchScalarGridSpec(
        num_scalar_prefetch=0,
        grid=grid,
        in_specs=[
            pl.BlockSpec((row_tile, feat), lambda i: (i, 0)),
            pl.BlockSpec((1, feat), lambda i: (0, 0)),
        ],
        out_specs=pl.BlockSpec((row_tile, feat), lambda i: (i, 0)),
    )

    out2 = pl.pallas_call(
        _pe_add_kernel,
        out_shape=jax.ShapeDtypeStruct((batch, feat), x.dtype),
        grid_spec=grid_spec,
        compiler_params=pltpu.CompilerParams(
            dimension_semantics=("parallel",),
            vmem_limit_bytes=vmem_limit,
        ),
    )(x2, pe2)

    return out2.reshape(batch, pad_size, embed)


if __name__ == "__main__":
    # Small shapes consistent with the module: batch=2, pad_size=8, embed=32.
    batch, pad_size, embed = 2, 8, 32
    dropout_p = 0.1  # unused in eval mode (identity)

    key = jax.random.PRNGKey(0)
    x = jax.random.normal(key, (batch, pad_size, embed), dtype=jnp.float32)

    # Built once, reused across forwards (mirrors the PyTorch buffer).
    pe = make_positional_encoding_table(embed, pad_size)

    out = positional_encoding_forward(x, pe)
    out = jax.block_until_ready(out)

    # Sanity check against plain-JAX reference (eval-mode dropout = identity).
    ref = x + pe[None, :, :]
    assert out.shape == x.shape
    assert jnp.allclose(out, ref, atol=1e-6), "mismatch vs reference"

    print("KERNEL_OK")
</pallas_src>

<mosaic_0001>
module attributes {stable_mosaic.version = 11 : i64} {
  func.func @_pe_add_kernel(%arg0: i32, %arg1: memref<2x256xf32, #tpu.memory_space<vmem>>, %arg2: memref<1x256xf32, #tpu.memory_space<vmem>>, %arg3: memref<2x256xf32, #tpu.memory_space<vmem>>) attributes {dimension_semantics = [#tpu.dimension_semantics<parallel>], iteration_bounds = array<i64: 1>, scalar_prefetch = 0 : i64, scratch_operands = 0 : i64, tpu.core_type = #tpu.core_type<tc>, window_params = [{transform_indices = @transform_0, window_bounds = array<i64: 2, 256>}, {pipeline_mode = #tpu.pipeline_mode<synchronous>, transform_indices = @transform_1, window_bounds = array<i64: 1, 256>}, {transform_indices = @transform_2, window_bounds = array<i64: 2, 256>}]} {
    %c0 = arith.constant 0 : index
    %c0_0 = arith.constant 0 : index
    %0 = vector.load %arg1[%c0, %c0_0] : memref<2x256xf32, #tpu.memory_space<vmem>>, vector<2x256xf32>
    %c0_1 = arith.constant 0 : index
    %c0_2 = arith.constant 0 : index
    %1 = vector.load %arg2[%c0_1, %c0_2] : memref<1x256xf32, #tpu.memory_space<vmem>>, vector<1x256xf32>
    %2 = vector.broadcast %1 : vector<1x256xf32> to vector<2x256xf32>
    %3 = arith.addf %0, %2 : vector<2x256xf32>
    %c0_3 = arith.constant 0 : index
    %c0_4 = arith.constant 0 : index
    %4 = vector.load %arg3[%c0_3, %c0_4] : memref<2x256xf32, #tpu.memory_space<vmem>>, vector<2x256xf32>
    tpu.vector_store %arg3[%c0_3, %c0_4], %3 {strides = array<i32>} : memref<2x256xf32, #tpu.memory_space<vmem>>, vector<2x256xf32>,
    return
  }
  func.func @transform_0(%arg0: i32) -> (i32, i32) {
    %c0_i32 = arith.constant 0 : i32
    %c0_i32_0 = arith.constant 0 : i32
    return %arg0, %c0_i32 : i32, i32
  }
  func.func @transform_1(%arg0: i32) -> (i32, i32) {
    %c0_i32 = arith.constant 0 : i32
    %c0_i32_0 = arith.constant 0 : i32
    %c0_i32_1 = arith.constant 0 : i32
    return %c0_i32, %c0_i32_0 : i32, i32
  }
  func.func @transform_2(%arg0: i32) -> (i32, i32) {
    %c0_i32 = arith.constant 0 : i32
    %c0_i32_0 = arith.constant 0 : i32
    return %arg0, %c0_i32 : i32, i32
  }
}

</mosaic_0001>

<bundles_post_ra>
// kernel: tpu_custom_call.1
= control target key start
LH: loop header
LB: loop body
LE: loop exit
PB: predicated region body
PF: predicated region fallthrough
CT: control target
= control target key end

     0   :  { %7 = vsyncpa [#allocation3], 0  ;;  %s177_s0 = inlined_call_operand.hbm [shape: f32[2,256], index: 0, kind: input, shape index: {}]   ;;  %s178_s1 = inlined_call_operand.hbm [shape: f32[1,256], index: 1, kind: input, shape index: {}]   ;;  %s179_s2 = inlined_call_operand.hbm [shape: f32[2,256], index: 2, kind: output, shape index: {}]  }
   0x1   :  { %8 = vsyncpa [#allocation6], 0 }
   0x2   :  { %9 = vsyncpa [#allocation4], 0  ;;  %s15_s11 = sshll.u32 %s177_s0, 4  ;;  %s150_s12 = smov [#allocation2]   ;;  %s16_s11 = int_to_ptr.hbm [resolvable:$true] %s15_s11 }
   0x3   :  { %s17_s13 = sshll.u32 %s150_s12, 4  ;;  %s26_s16 = sshll.u32 %s178_s1, 4  ;;  %s18_s13 = int_to_ptr.vmem [resolvable:$true] %s17_s13  ;;  %s27_s16 = int_to_ptr.hbm [resolvable:$true] %s26_s16 }
   0x4   :  { %20 = dma.hbm_to_vmem [thread:$0]  %s16_s11, 64, %s18_s13, [#allocation3]  }
   0x5   :  { %s151_s17 = smov [#allocation5]  }
   0x6   :  { %s28_s18 = sshll.u32 %s151_s17, 4  ;;  %s29_s18 = int_to_ptr.vmem [resolvable:$true] %s28_s18 }
   0x7   :  { %31 = dma.hbm_to_vmem [thread:$0]  %s27_s16, 32, %s29_s18, [#allocation6]  }
   0x8   :  { %144 = dma.done.wait [#allocation3], 64  }
   0x9   :  { %145 = vsyncadd [#allocation3], 4294967232 }
   0xa   :  { %146 = dma.done.wait [#allocation6], 32  }
   0xb   :  { %147 = vsyncadd [#allocation6], 4294967264  ;;  %v41_v0 = vld [vmem:[#allocation5] sm:$0x3]  ;;  %vm46_vm0 = vcmask 1041408   ;;  %s152_s0 = smov [#allocation7]  }
   0xc   :  { %v43_v1 = vperm.slane %v41_v0, 0  ;;  %v44_v2 = vperm.slane %v41_v0, 1  ;;  %v40_v3 = vld [vmem:[#allocation2] sm:$0xf]  ;;  %s56_s19 = sshll.u32 %s152_s0, 4  ;;  %s58_s21 = sshll.u32 %s179_s2, 4  ;;  %s57_s19 = int_to_ptr.vmem [resolvable:$true] %s56_s19  ;;  %s59_s21 = int_to_ptr.hbm [resolvable:$true] %s58_s21 }
   0xe   :  { %v45_v4 = vrot.slane %v44_v2, 6 }
  0x10   :  { %v47_v5 = vsel %vm46_vm0, %v43_v1, %v45_v4 }
  0x11   :  { %v49_v6 = vadd.f32 %v47_v5, %v40_v3 }
  0x13   :  { %50 = vst [vmem:[#allocation7] sm:$0xf] %v49_v6 }
  0x14   :  { %61 = dma.vmem_to_hbm [thread:$0]  %s57_s19, 64, %s59_s21, [#allocation4]  }
  0x15   :  { %148 = dma.done.wait [#allocation4], 64  }
  0x16   :  { %149 = vsyncadd [#allocation4], 4294967232 }
  0x17   :  { %66 = vsyncpa [#allocation3], 1 }
  0x18   :  { %67 = vsyncpa [#allocation6], 1 }
  0x19   :  { %68 = vsyncpa [#allocation4], 1 }

</bundles_post_ra>
